<compile_context>
chip_gen: v6e
topology: v6e:2x2x1
jax: 0.10.0
libtpu: 0.0.40
codegen_flags: <defaults>
</compile_context>

<pallas_src>
import jax
import jax.numpy as jnp
from jax.experimental import pallas as pl
from jax.experimental.pallas import tpu as pltpu


_NEG_SLOPE = 0.01       # PyTorch nn.LeakyReLU default
_OUT_PAD = 128          # lane-dense padded fc2 output width (true width = 4)


def _round_up(x, m):
    return ((x + m - 1) // m) * m


def _vmem_capacity_bytes():
    try:
        cap = getattr(pltpu.get_tpu_info(), "vmem_capacity_bytes", None)
        if cap:
            return int(cap)
    except Exception:
        pass
    return 128 * 1024 * 1024


def _angle_predictor_kernel(x_ref, w1_ref, b1_ref, w2_ref, b2_ref, o_ref,
                            acc_ref):
    """One (batch-tile, fc1-column-tile) grid step.

    x_ref  : (tb, Hp)       activations
    w1_ref : (Hp, tn)       fc1 weight column block (resident when tn == Hp)
    b1_ref : (1, tn)        fc1 bias slice
    w2_ref : (tn, 128)      fc2 weight rows matching this fc1 column block
    b2_ref : (1, 128)       fc2 bias (padded 4 -> 128)
    o_ref  : (tb, 128)      lane-dense output tile
    acc_ref: (tb, 128) f32  accumulator over the fc1-column axis
    """
    n = pl.program_id(1)

    @pl.when(n == 0)
    def _():
        acc_ref[...] = jnp.zeros_like(acc_ref)

    # fc1 on the MXU: cast activations to the weight dtype (full-rate bf16
    # path when params are bf16); accumulate in f32.
    x = x_ref[...].astype(w1_ref.dtype)
    y1 = jnp.dot(x, w1_ref[...], preferred_element_type=jnp.float32)
    y1 = y1 + b1_ref[...].astype(jnp.float32)

    # LeakyReLU (slope 0.01) in f32 vregs: one vmul + one vmax. Exact, and
    # elementwise, so splitting fc1's output columns across grid steps is exact.
    y1 = jnp.maximum(y1, _NEG_SLOPE * y1)

    # fc2 contribution of this fc1-column block, accumulated in f32.
    acc_ref[...] += jnp.dot(y1.astype(w2_ref.dtype), w2_ref[...],
                            preferred_element_type=jnp.float32)

    @pl.when(n == pl.num_programs(1) - 1)
    def _():
        o_ref[...] = (acc_ref[...] + b2_ref[...].astype(jnp.float32)
                      ).astype(o_ref.dtype)


def prepare_angle_predictor_params(w1, b1, w2, b2, param_dtype=None):
    """One-time layout transform of the AnglePredictor parameters.

    w1: (H, H), b1: (H,), w2: (H, 4), b2: (4,)   — weights stored
    (in_features, out_features), the transpose of PyTorch's (out, in).

    Zero-pads H to a multiple of 128 lanes and the fc2 output 4 -> 128 lanes
    (mathematically exact for Linear + LeakyReLU).  Optionally casts the
    parameters (e.g. param_dtype=jnp.bfloat16 for the full-rate MXU path).
    Call this ONCE; the per-call wrapper does no weight padding.
    """
    H, H2 = w1.shape
    assert H == H2, "fc1 must be (hidden, hidden)"
    n_out = w2.shape[1]
    Hp = _round_up(H, 128)

    if param_dtype is not None:
        w1, b1, w2, b2 = (a.astype(param_dtype) for a in (w1, b1, w2, b2))

    if Hp != H:
        w1 = jnp.pad(w1, ((0, Hp - H), (0, Hp - H)))
        b1 = jnp.pad(b1, (0, Hp - H))
        w2 = jnp.pad(w2, ((0, Hp - H), (0, 0)))
    if n_out != _OUT_PAD:
        w2 = jnp.pad(w2, ((0, 0), (0, _OUT_PAD - n_out)))
        b2 = jnp.pad(b2, (0, _OUT_PAD - n_out))

    return {
        "w1": w1,                        # (Hp, Hp)
        "b1": b1.reshape(1, Hp),         # (1, Hp)
        "w2": w2,                        # (Hp, 128)
        "b2": b2.reshape(1, _OUT_PAD),   # (1, 128)
        "hidden": H,
        "n_out": n_out,
    }


def angle_predictor(h, params, *, batch_tile=512, _force_tn=None):
    """AnglePredictor forward pass.

    h      : (B, H) activations (f32 or bf16)
    params : dict from prepare_angle_predictor_params()
    returns (B, 4) in h.dtype
    """
    B, H = h.shape
    assert H == params["hidden"]
    w1_p, b1_p, w2_p, b2_p = params["w1"], params["b1"], params["w2"], params["b2"]
    Hp = w1_p.shape[0]
    n_out = params["n_out"]
    out_dtype = h.dtype

    x_isz = jnp.dtype(h.dtype).itemsize
    w_isz = jnp.dtype(w1_p.dtype).itemsize
    o_isz = jnp.dtype(out_dtype).itemsize

    vmem_cap = _vmem_capacity_bytes()
    vmem_ceiling = int(vmem_cap * 0.78)   # ~100 MiB on 128 MiB parts, ~50 MiB on v7x

    # ---- batch tiling (sublane-aligned; bf16 vregs pack (16, 128)) ----------
    align = 16 if h.dtype == jnp.bfloat16 else 8
    Bp = _round_up(max(B, align), align)

    # Cap the pipelined x double-buffer at ~1/3 of the VMEM budget.
    tb_cap = max(align,
                 (((vmem_ceiling // 3) // (2 * Hp * x_isz)) // align) * align)
    tb = min(_round_up(batch_tile, align), Bp, tb_cap)
    if Bp <= tb and Bp >= 2 * align:
        # Split into >= 2 batch tiles so both v7x TensorCores get work.
        tb = _round_up(pl.cdiv(Bp, 2), align)
    n_bt = pl.cdiv(Bp, tb)
    tb = _round_up(pl.cdiv(Bp, n_bt), align)   # even out tiles, minimize padding
    Bp = _round_up(Bp, tb)

    # ---- fc1 column tiling (keeps the W1 block within VMEM for large H) -----
    act_bytes = (2 * tb * Hp * x_isz            # pipelined x tiles
                 + 2 * tb * _OUT_PAD * o_isz    # pipelined out tiles
                 + tb * _OUT_PAD * 4)           # f32 accumulator scratch
    w_budget = max(vmem_ceiling - act_bytes - (4 << 20), 2 << 20)
    if _force_tn is not None:
        tn = _force_tn
    elif (Hp * Hp + Hp + Hp * _OUT_PAD + _OUT_PAD) * w_isz <= w_budget:
        tn = Hp                                  # whole W1 stays VMEM-resident
    else:
        # Largest multiple of 128 dividing Hp whose double-buffered blocks fit.
        max_tn = w_budget // (2 * (Hp + _OUT_PAD + 1) * w_isz)
        tn = 128
        t = 128
        while t <= Hp:
            if Hp % t == 0 and t <= max_tn:
                tn = t
            t += 128
    assert Hp % tn == 0
    n_steps = Hp // tn
    resident = n_steps == 1   # weight index_maps constant across the grid

    # ---- conditional activation padding (skip when already aligned) ---------
    if (Bp, Hp) != (B, H):
        h_p = jnp.pad(h, ((0, Bp - B), (0, Hp - H)))
    else:
        h_p = h

    grid = (Bp // tb, n_steps)

    # VMEM footprint estimate (assume double-buffered weights -> conservative),
    # clamped to the per-generation ceiling.
    weight_bytes = 2 * (Hp * tn + tn + tn * _OUT_PAD + _OUT_PAD) * w_isz
    footprint = act_bytes + weight_bytes + tb * tn * 4 + (4 << 20)
    vmem_limit = int(min(vmem_ceiling, max(footprint, 16 << 20)))

    flops = 2 * Bp * Hp * Hp + 2 * Bp * Hp * _OUT_PAD
    bytes_accessed = (h_p.size * x_isz
                      + (w1_p.size + b1_p.size + w2_p.size + b2_p.size) * w_isz
                      + Bp * _OUT_PAD * o_isz)

    def _in_specs(single_buffer):
        def spec(shape, idx, const):
            if single_buffer and const:
                # Constant block index -> no need to double-buffer; halves the
                # resident weight footprint.
                return pl.BlockSpec(shape, idx, pipeline_mode=pl.Buffered(1))
            return pl.BlockSpec(shape, idx)
        return [
            spec((tb, Hp), lambda i, n: (i, 0), False),           # x (batch-pipelined)
            spec((Hp, tn), lambda i, n: (0, n), resident),        # W1 column block
            spec((1, tn), lambda i, n: (0, n), resident),         # b1 slice
            spec((tn, _OUT_PAD), lambda i, n: (n, 0), resident),  # W2 row block
            spec((1, _OUT_PAD), lambda i, n: (0, 0), True),       # b2 (always const)
        ]

    def _call(single_buffer):
        return pl.pallas_call(
            _angle_predictor_kernel,
            out_shape=jax.ShapeDtypeStruct((Bp, _OUT_PAD), out_dtype),
            grid_spec=pltpu.PrefetchScalarGridSpec(
                num_scalar_prefetch=0,
                grid=grid,
                in_specs=_in_specs(single_buffer),
                out_specs=pl.BlockSpec((tb, _OUT_PAD), lambda i, n: (i, 0)),
                scratch_shapes=[pltpu.VMEM((tb, _OUT_PAD), jnp.float32)],
            ),
            compiler_params=pltpu.CompilerParams(
                dimension_semantics=("parallel", "arbitrary"),
                vmem_limit_bytes=vmem_limit,
            ),
            cost_estimate=pl.CostEstimate(
                flops=flops, transcendentals=0, bytes_accessed=bytes_accessed),
        )(h_p, w1_p, b1_p, w2_p, b2_p)

    try:
        out_p = _call(True)
    except Exception:
        # Fallback if pl.Buffered(1) single-buffering is not supported by this
        # JAX version; default double-buffering is always correct.
        out_p = _call(False)

    return out_p[:B, :n_out]


def _reference(h, w1, b1, w2, b2):
    y1 = jnp.dot(h, w1, precision=jax.lax.Precision.HIGHEST) + b1
    y1 = jnp.where(y1 > 0, y1, _NEG_SLOPE * y1)
    return jnp.dot(y1, w2, precision=jax.lax.Precision.HIGHEST) + b2


def _make_inputs(key, batch, hidden, dtype=jnp.float32):
    k_h, k_w1, k_b1, k_w2, k_b2 = jax.random.split(key, 5)
    bound = 1.0 / (hidden ** 0.5)
    h = jax.random.normal(k_h, (batch, hidden), dtype=dtype)
    # Stored as (in_features, out_features) — transpose of PyTorch's (out, in).
    w1 = jax.random.uniform(k_w1, (hidden, hidden), minval=-bound, maxval=bound,
                            dtype=dtype)
    b1 = jax.random.uniform(k_b1, (hidden,), minval=-bound, maxval=bound,
                            dtype=dtype)
    w2 = jax.random.uniform(k_w2, (hidden, 4), minval=-bound, maxval=bound,
                            dtype=dtype)
    b2 = jax.random.uniform(k_b2, (4,), minval=-bound, maxval=bound, dtype=dtype)
    return h, w1, b1, w2, b2


if __name__ == "__main__":
    key = jax.random.PRNGKey(0)
    k1, k2 = jax.random.split(key)

    # --- Test 1: small hidden, resident-weight path ------------------------
    h, w1, b1, w2, b2 = _make_inputs(k1, batch=8, hidden=32)
    params = prepare_angle_predictor_params(w1, b1, w2, b2)   # one-time padding
    out = jax.block_until_ready(angle_predictor(h, params))
    ref = _reference(h, w1, b1, w2, b2)
    assert out.shape == (8, 4)
    assert jnp.allclose(out, ref, atol=1e-5, rtol=1e-5), "mismatch (resident path)"

    # --- Test 2: forced fc1-column tiling (large-H / v7x code path) --------
    h2, w1b, b1b, w2b, b2b = _make_inputs(k2, batch=16, hidden=256)
    params2 = prepare_angle_predictor_params(w1b, b1b, w2b, b2b)
    out2 = jax.block_until_ready(angle_predictor(h2, params2, _force_tn=128))
    ref2 = _reference(h2, w1b, b1b, w2b, b2b)
    assert out2.shape == (16, 4)
    assert jnp.allclose(out2, ref2, atol=1e-4, rtol=1e-4), "mismatch (tiled path)"

    print("KERNEL_OK")
</pallas_src>

<mosaic_0001>
module attributes {stable_mosaic.version = 11 : i64} {
  func.func @_angle_predictor_kernel(%arg0: i32, %arg1: i32, %arg2: memref<8x128xf32, #tpu.memory_space<vmem>>, %arg3: memref<128x128xf32, #tpu.memory_space<vmem>>, %arg4: memref<1x128xf32, #tpu.memory_space<vmem>>, %arg5: memref<128x128xf32, #tpu.memory_space<vmem>>, %arg6: memref<1x128xf32, #tpu.memory_space<vmem>>, %arg7: memref<8x128xf32, #tpu.memory_space<vmem>>, %arg8: memref<8x128xf32, #tpu.memory_space<vmem>>) attributes {dimension_semantics = [#tpu.dimension_semantics<parallel>, #tpu.dimension_semantics<arbitrary>], iteration_bounds = array<i64: 1, 1>, scalar_prefetch = 0 : i64, scratch_operands = 1 : i64, tpu.core_type = #tpu.core_type<tc>, window_params = [{transform_indices = @transform_0, window_bounds = array<i64: 8, 128>}, {pipeline_mode = #tpu.pipeline_mode<synchronous>, transform_indices = @transform_1, window_bounds = array<i64: 128, 128>}, {pipeline_mode = #tpu.pipeline_mode<synchronous>, transform_indices = @transform_2, window_bounds = array<i64: 1, 128>}, {pipeline_mode = #tpu.pipeline_mode<synchronous>, transform_indices = @transform_3, window_bounds = array<i64: 128, 128>}, {pipeline_mode = #tpu.pipeline_mode<synchronous>, transform_indices = @transform_4, window_bounds = array<i64: 1, 128>}, {transform_indices = @transform_5, window_bounds = array<i64: 8, 128>}]} {
    %c0_i32 = arith.constant 0 : i32
    %0 = arith.cmpi eq, %arg1, %c0_i32 : i32
    %1 = arith.extui %0 : i1 to i32
    %c0_i32_0 = arith.constant 0 : i32
    %2 = arith.cmpi ne, %1, %c0_i32_0 : i32
    scf.if %2 {
      %cst_16 = arith.constant 0.000000e+00 : f32
      %20 = vector.broadcast %cst_16 : f32 to vector<8x128xf32>
      %c0_17 = arith.constant 0 : index
      %c0_18 = arith.constant 0 : index
      %21 = vector.load %arg8[%c0_17, %c0_18] : memref<8x128xf32, #tpu.memory_space<vmem>>, vector<8x128xf32>
      tpu.vector_store %arg8[%c0_17, %c0_18], %20 {strides = array<i32>} : memref<8x128xf32, #tpu.memory_space<vmem>>, vector<8x128xf32>,
    } else {
    }
    %c0 = arith.constant 0 : index
    %c0_1 = arith.constant 0 : index
    %3 = vector.load %arg2[%c0, %c0_1] : memref<8x128xf32, #tpu.memory_space<vmem>>, vector<8x128xf32>
    %c0_2 = arith.constant 0 : index
    %c0_3 = arith.constant 0 : index
    %4 = vector.load %arg3[%c0_2, %c0_3] : memref<128x128xf32, #tpu.memory_space<vmem>>, vector<128x128xf32>
    %cst = arith.constant dense<0.000000e+00> : vector<8x128xf32>
    %5 = tpu.matmul %3, %4, %cst {dimension_numbers = #tpu.dot_dimension_numbers<[1], [0], [0], [1], [0, 0, 1, 1], [], []>} : vector<8x128xf32>, vector<128x128xf32>, vector<8x128xf32> -> vector<8x128xf32>
    %c0_4 = arith.constant 0 : index
    %c0_5 = arith.constant 0 : index
    %6 = vector.load %arg4[%c0_4, %c0_5] : memref<1x128xf32, #tpu.memory_space<vmem>>, vector<1x128xf32>
    %7 = vector.broadcast %6 : vector<1x128xf32> to vector<8x128xf32>
    %8 = arith.addf %5, %7 : vector<8x128xf32>
    %cst_6 = arith.constant 0.00999999977 : f32
    %9 = vector.broadcast %cst_6 : f32 to vector<8x128xf32>
    %10 = arith.mulf %9, %8 : vector<8x128xf32>
    %11 = arith.maximumf %8, %10 : vector<8x128xf32>
    %c0_7 = arith.constant 0 : index
    %c0_8 = arith.constant 0 : index
    %12 = vector.load %arg8[%c0_7, %c0_8] : memref<8x128xf32, #tpu.memory_space<vmem>>, vector<8x128xf32>
    %c0_9 = arith.constant 0 : index
    %c0_10 = arith.constant 0 : index
    %13 = vector.load %arg5[%c0_9, %c0_10] : memref<128x128xf32, #tpu.memory_space<vmem>>, vector<128x128xf32>
    %cst_11 = arith.constant dense<0.000000e+00> : vector<8x128xf32>
    %14 = tpu.matmul %11, %13, %cst_11 {dimension_numbers = #tpu.dot_dimension_numbers<[1], [0], [0], [1], [0, 0, 1, 1], [], []>} : vector<8x128xf32>, vector<128x128xf32>, vector<8x128xf32> -> vector<8x128xf32>
    %15 = arith.addf %12, %14 : vector<8x128xf32>
    %c0_12 = arith.constant 0 : index
    %c0_13 = arith.constant 0 : index
    %16 = vector.load %arg8[%c0_12, %c0_13] : memref<8x128xf32, #tpu.memory_space<vmem>>, vector<8x128xf32>
    tpu.vector_store %arg8[%c0_12, %c0_13], %15 {strides = array<i32>} : memref<8x128xf32, #tpu.memory_space<vmem>>, vector<8x128xf32>,
    %c0_i32_14 = arith.constant 0 : i32
    %17 = arith.cmpi eq, %arg1, %c0_i32_14 : i32
    %18 = arith.extui %17 : i1 to i32
    %c0_i32_15 = arith.constant 0 : i32
    %19 = arith.cmpi ne, %18, %c0_i32_15 : i32
    scf.if %19 {
      %c0_16 = arith.constant 0 : index
      %c0_17 = arith.constant 0 : index
      %20 = vector.load %arg8[%c0_16, %c0_17] : memref<8x128xf32, #tpu.memory_space<vmem>>, vector<8x128xf32>
      %c0_18 = arith.constant 0 : index
      %c0_19 = arith.constant 0 : index
      %21 = vector.load %arg6[%c0_18, %c0_19] : memref<1x128xf32, #tpu.memory_space<vmem>>, vector<1x128xf32>
      %22 = vector.broadcast %21 : vector<1x128xf32> to vector<8x128xf32>
      %23 = arith.addf %20, %22 : vector<8x128xf32>
      %c0_20 = arith.constant 0 : index
      %c0_21 = arith.constant 0 : index
      %24 = vector.load %arg7[%c0_20, %c0_21] : memref<8x128xf32, #tpu.memory_space<vmem>>, vector<8x128xf32>
      tpu.vector_store %arg7[%c0_20, %c0_21], %23 {strides = array<i32>} : memref<8x128xf32, #tpu.memory_space<vmem>>, vector<8x128xf32>,
    } else {
    }
    return
  }
  func.func @transform_0(%arg0: i32, %arg1: i32) -> (i32, i32) {
    %c0_i32 = arith.constant 0 : i32
    %c0_i32_0 = arith.constant 0 : i32
    return %arg0, %c0_i32 : i32, i32
  }
  func.func @transform_1(%arg0: i32, %arg1: i32) -> (i32, i32) {
    %c0_i32 = arith.constant 0 : i32
    %c0_i32_0 = arith.constant 0 : i32
    return %c0_i32, %arg1 : i32, i32
  }
  func.func @transform_2(%arg0: i32, %arg1: i32) -> (i32, i32) {
    %c0_i32 = arith.constant 0 : i32
    %c0_i32_0 = arith.constant 0 : i32
    return %c0_i32, %arg1 : i32, i32
  }
  func.func @transform_3(%arg0: i32, %arg1: i32) -> (i32, i32) {
    %c0_i32 = arith.constant 0 : i32
    %c0_i32_0 = arith.constant 0 : i32
    return %arg1, %c0_i32 : i32, i32
  }
  func.func @transform_4(%arg0: i32, %arg1: i32) -> (i32, i32) {
    %c0_i32 = arith.constant 0 : i32
    %c0_i32_0 = arith.constant 0 : i32
    %c0_i32_1 = arith.constant 0 : i32
    return %c0_i32, %c0_i32_0 : i32, i32
  }
  func.func @transform_5(%arg0: i32, %arg1: i32) -> (i32, i32) {
    %c0_i32 = arith.constant 0 : i32
    %c0_i32_0 = arith.constant 0 : i32
    return %arg0, %c0_i32 : i32, i32
  }
}

module attributes {stable_mosaic.version = 11 : i64} {
  func.func @_angle_predictor_kernel(%arg0: i32, %arg1: i32, %arg2: memref<8x128xf32, #tpu.memory_space<vmem>>, %arg3: memref<128x128xf32, #tpu.memory_space<vmem>>, %arg4: memref<1x128xf32, #tpu.memory_space<vmem>>, %arg5: memref<128x128xf32, #tpu.memory_space<vmem>>, %arg6: memref<1x128xf32, #tpu.memory_space<vmem>>, %arg7: memref<8x128xf32, #tpu.memory_space<vmem>>, %arg8: memref<8x128xf32, #tpu.memory_space<vmem>>) attributes {dimension_semantics = [#tpu.dimension_semantics<parallel>, #tpu.dimension_semantics<arbitrary>], iteration_bounds = array<i64: 1, 1>, scalar_prefetch = 0 : i64, scratch_operands = 1 : i64, tpu.core_type = #tpu.core_type<tc>, window_params = [{transform_indices = @transform_0, window_bounds = array<i64: 8, 128>}, {transform_indices = @transform_1, window_bounds = array<i64: 128, 128>}, {transform_indices = @transform_2, window_bounds = array<i64: 1, 128>}, {transform_indices = @transform_3, window_bounds = array<i64: 128, 128>}, {pipeline_mode = #tpu.pipeline_mode<synchronous>, transform_indices = @transform_4, window_bounds = array<i64: 1, 128>}, {transform_indices = @transform_5, window_bounds = array<i64: 8, 128>}]} {
    %c0_i32 = arith.constant 0 : i32
    %0 = arith.cmpi eq, %arg1, %c0_i32 : i32
    %1 = arith.extui %0 : i1 to i32
    %c0_i32_0 = arith.constant 0 : i32
    %2 = arith.cmpi ne, %1, %c0_i32_0 : i32
    scf.if %2 {
      %cst_16 = arith.constant 0.000000e+00 : f32
      %20 = vector.broadcast %cst_16 : f32 to vector<8x128xf32>
      %c0_17 = arith.constant 0 : index
      %c0_18 = arith.constant 0 : index
      %21 = vector.load %arg8[%c0_17, %c0_18] : memref<8x128xf32, #tpu.memory_space<vmem>>, vector<8x128xf32>
      tpu.vector_store %arg8[%c0_17, %c0_18], %20 {strides = array<i32>} : memref<8x128xf32, #tpu.memory_space<vmem>>, vector<8x128xf32>,
    } else {
    }
    %c0 = arith.constant 0 : index
    %c0_1 = arith.constant 0 : index
    %3 = vector.load %arg2[%c0, %c0_1] : memref<8x128xf32, #tpu.memory_space<vmem>>, vector<8x128xf32>
    %c0_2 = arith.constant 0 : index
    %c0_3 = arith.constant 0 : index
    %4 = vector.load %arg3[%c0_2, %c0_3] : memref<128x128xf32, #tpu.memory_space<vmem>>, vector<128x128xf32>
    %cst = arith.constant dense<0.000000e+00> : vector<8x128xf32>
    %5 = tpu.matmul %3, %4, %cst {dimension_numbers = #tpu.dot_dimension_numbers<[1], [0], [0], [1], [0, 0, 1, 1], [], []>} : vector<8x128xf32>, vector<128x128xf32>, vector<8x128xf32> -> vector<8x128xf32>
    %c0_4 = arith.constant 0 : index
    %c0_5 = arith.constant 0 : index
    %6 = vector.load %arg4[%c0_4, %c0_5] : memref<1x128xf32, #tpu.memory_space<vmem>>, vector<1x128xf32>
    %7 = vector.broadcast %6 : vector<1x128xf32> to vector<8x128xf32>
    %8 = arith.addf %5, %7 : vector<8x128xf32>
    %cst_6 = arith.constant 0.00999999977 : f32
    %9 = vector.broadcast %cst_6 : f32 to vector<8x128xf32>
    %10 = arith.mulf %9, %8 : vector<8x128xf32>
    %11 = arith.maximumf %8, %10 : vector<8x128xf32>
    %c0_7 = arith.constant 0 : index
    %c0_8 = arith.constant 0 : index
    %12 = vector.load %arg8[%c0_7, %c0_8] : memref<8x128xf32, #tpu.memory_space<vmem>>, vector<8x128xf32>
    %c0_9 = arith.constant 0 : index
    %c0_10 = arith.constant 0 : index
    %13 = vector.load %arg5[%c0_9, %c0_10] : memref<128x128xf32, #tpu.memory_space<vmem>>, vector<128x128xf32>
    %cst_11 = arith.constant dense<0.000000e+00> : vector<8x128xf32>
    %14 = tpu.matmul %11, %13, %cst_11 {dimension_numbers = #tpu.dot_dimension_numbers<[1], [0], [0], [1], [0, 0, 1, 1], [], []>} : vector<8x128xf32>, vector<128x128xf32>, vector<8x128xf32> -> vector<8x128xf32>
    %15 = arith.addf %12, %14 : vector<8x128xf32>
    %c0_12 = arith.constant 0 : index
    %c0_13 = arith.constant 0 : index
    %16 = vector.load %arg8[%c0_12, %c0_13] : memref<8x128xf32, #tpu.memory_space<vmem>>, vector<8x128xf32>
    tpu.vector_store %arg8[%c0_12, %c0_13], %15 {strides = array<i32>} : memref<8x128xf32, #tpu.memory_space<vmem>>, vector<8x128xf32>,
    %c0_i32_14 = arith.constant 0 : i32
    %17 = arith.cmpi eq, %arg1, %c0_i32_14 : i32
    %18 = arith.extui %17 : i1 to i32
    %c0_i32_15 = arith.constant 0 : i32
    %19 = arith.cmpi ne, %18, %c0_i32_15 : i32
    scf.if %19 {
      %c0_16 = arith.constant 0 : index
      %c0_17 = arith.constant 0 : index
      %20 = vector.load %arg8[%c0_16, %c0_17] : memref<8x128xf32, #tpu.memory_space<vmem>>, vector<8x128xf32>
      %c0_18 = arith.constant 0 : index
      %c0_19 = arith.constant 0 : index
      %21 = vector.load %arg6[%c0_18, %c0_19] : memref<1x128xf32, #tpu.memory_space<vmem>>, vector<1x128xf32>
      %22 = vector.broadcast %21 : vector<1x128xf32> to vector<8x128xf32>
      %23 = arith.addf %20, %22 : vector<8x128xf32>
      %c0_20 = arith.constant 0 : index
      %c0_21 = arith.constant 0 : index
      %24 = vector.load %arg7[%c0_20, %c0_21] : memref<8x128xf32, #tpu.memory_space<vmem>>, vector<8x128xf32>
      tpu.vector_store %arg7[%c0_20, %c0_21], %23 {strides = array<i32>} : memref<8x128xf32, #tpu.memory_space<vmem>>, vector<8x128xf32>,
    } else {
    }
    return
  }
  func.func @transform_0(%arg0: i32, %arg1: i32) -> (i32, i32) {
    %c0_i32 = arith.constant 0 : i32
    %c0_i32_0 = arith.constant 0 : i32
    return %arg0, %c0_i32 : i32, i32
  }
  func.func @transform_1(%arg0: i32, %arg1: i32) -> (i32, i32) {
    %c0_i32 = arith.constant 0 : i32
    %c0_i32_0 = arith.constant 0 : i32
    return %c0_i32, %arg1 : i32, i32
  }
  func.func @transform_2(%arg0: i32, %arg1: i32) -> (i32, i32) {
    %c0_i32 = arith.constant 0 : i32
    %c0_i32_0 = arith.constant 0 : i32
    return %c0_i32, %arg1 : i32, i32
  }
  func.func @transform_3(%arg0: i32, %arg1: i32) -> (i32, i32) {
    %c0_i32 = arith.constant 0 : i32
    %c0_i32_0 = arith.constant 0 : i32
    return %arg1, %c0_i32 : i32, i32
  }
  func.func @transform_4(%arg0: i32, %arg1: i32) -> (i32, i32) {
    %c0_i32 = arith.constant 0 : i32
    %c0_i32_0 = arith.constant 0 : i32
    %c0_i32_1 = arith.constant 0 : i32
    return %c0_i32, %c0_i32_0 : i32, i32
  }
  func.func @transform_5(%arg0: i32, %arg1: i32) -> (i32, i32) {
    %c0_i32 = arith.constant 0 : i32
    %c0_i32_0 = arith.constant 0 : i32
    return %arg0, %c0_i32 : i32, i32
  }
}

</mosaic_0001>

<bundles_post_ra>
// kernel: tpu_custom_call.1
= control target key start
LH: loop header
LB: loop body
LE: loop exit
PB: predicated region body
PF: predicated region fallthrough
CT: control target
= control target key end

     0   :  { %10 = vsyncpa [#allocation4], 0  ;;  %s569_s0 = inlined_call_operand.hbm [shape: f32[8,128], index: 0, kind: input, shape index: {}]   ;;  %s570_s1 = inlined_call_operand.hbm [shape: f32[128,128], index: 1, kind: input, shape index: {}]   ;;  %s571_s2 = inlined_call_operand.vmem [shape: f32[1,128], index: 2, kind: input, shape index: {}]   ;;  %s572_s3 = inlined_call_operand.hbm [shape: f32[128,128], index: 3, kind: input, shape index: {}]   ;;  %s573_s4 = inlined_call_operand.vmem [shape: f32[1,128], index: 4, kind: input, shape index: {}]   ;;  %s574_s5 = inlined_call_operand.hbm [shape: f32[8,128], index: 5, kind: output, shape index: {}]  }
   0x1   :  { %11 = vsyncpa [#allocation7], 0 }
   0x2   :  { %12 = vsyncpa [#allocation5], 0  ;;  %s479_s18 = smov [#allocation6]  }
   0x3   :  { %s28_s19 = sshll.u32 %s479_s18, 4  ;;  %s29_s19 = int_to_ptr.vmem [resolvable:$true] %s28_s19 }
   0x4   :  { %s401_s20 = scalar_lea.vmem %s29_s19, 2048  ;;  %p406_p1 = scmp.lt.s32.totalorder %s29_s19, %s29_s19 }
   0x5   :  { %p402_p0 = scmp.ne.s32.totalorder %s29_s19, %s401_s20  ;;  %p407_p2 = scmp.lt.s32.totalorder %s401_s20, %s401_s20 }
   0x7   :  { %p408_p3 = por %p407_p2, %p406_p1 }
   0x9   :  { %p409_p4 = pnand %p408_p3, %p402_p0 }
   0xb   :  { %412 = shalt.err (!%p409_p4)
}
   0xc   :  { %s480_s21 = smov 128   ;;  %s481_s22 = smov 8  }
   0xd   :  { %34 = dma.hbm_to_vmem [thread:$0]  %s570_s1, 2048, %s29_s19, [#allocation7], %s480_s21, %s480_s21, %s481_s22  }
   0xe   :  { %s482_s25 = smov [#allocation3]   ;;  %s483_s27 = smov [#allocation8]  }
   0xf   :  { %s19_s26 = sshll.u32 %s482_s25, 4  ;;  %s42_s28 = sshll.u32 %s483_s27, 4  ;;  %s20_s26 = int_to_ptr.vmem [resolvable:$true] %s19_s26  ;;  %s43_s28 = int_to_ptr.vmem [resolvable:$true] %s42_s28 }
  0x10   :  { %s421_s29 = scalar_lea.vmem %s20_s26, 128  ;;  %p426_p6 = scmp.lt.s32.totalorder %s20_s26, %s20_s26 }
  0x11   :  { %p422_p5 = scmp.ne.s32.totalorder %s20_s26, %s421_s29  ;;  %p427_p7 = scmp.lt.s32.totalorder %s421_s29, %s421_s29 }
  0x13   :  { %p428_p8 = por %p427_p7, %p426_p6 }
  0x15   :  { %p429_p9 = pnand %p428_p8, %p422_p5 }
  0x17   :  { %432 = shalt.err (!%p429_p9)
}
  0x18   :  { %22 = dma.hbm_to_vmem [thread:$0]  %s569_s0, 128, %s20_s26, [#allocation4]  }
  0x19   :  { %s441_s7 = scalar_lea.vmem %s43_s28, 2048  ;;  %p446_p11 = scmp.lt.s32.totalorder %s43_s28, %s43_s28 }
  0x1a   :  { %p442_p10 = scmp.ne.s32.totalorder %s43_s28, %s441_s7  ;;  %p447_p12 = scmp.lt.s32.totalorder %s441_s7, %s441_s7 }
  0x1c   :  { %p448_p13 = por %p447_p12, %p446_p11 }
  0x1e   :  { %p449_p0 = pnand %p448_p13, %p442_p10 }
  0x20   :  { %452 = shalt.err (!%p449_p0)
}
  0x21   :  { %48 = dma.hbm_to_vmem [thread:$0]  %s572_s3, 2048, %s43_s28, [#allocation7], %s480_s21, %s480_s21, %s481_s22  }
  0x22   :  { %473 = dma.done.wait [#allocation4], 128  }
  0x23   :  { %474 = vsyncadd [#allocation4], 4294967168 }
  0x24   :  { %475 = dma.done.wait [#allocation7], 4096  }
  0x25   :  { %476 = vsyncadd [#allocation7], 4294963200  ;;  %v484_v0 = vmov 0.0   ;;  %vm485_vm0 = vmmov 0   ;;  %v81_v1 = vld [vmem:[#allocation6 + $0x78] sm:$0xff]  ;;  %v80_v2 = vld [vmem:[#allocation6 + $0x70] sm:$0xff] }
  0x26   :  { %315 = vmatprep.subr.mxu0 %v484_v0  ;;  %347 = vmatprep.mubr.msk.f32.mxu0 %vm485_vm0, %v484_v0  ;;  %v79_v3 = vld [vmem:[#allocation6 + $0x68] sm:$0xff]  ;;  %v78_v4 = vld [vmem:[#allocation6 + $0x60] sm:$0xff]  ;;  %v177_v5 = vld [vmem:[#allocation8 + $0x78] sm:$0xff]  ;;  %s486_s11 = smov [#allocation9]  }
  0x27   :  { %350 = vmatprep.subr.mxu1 %v484_v0  ;;  %382 = vmatprep.mubr.msk.f32.mxu1 %vm485_vm0, %v484_v0  ;;  %v77_v6 = vld [vmem:[#allocation6 + $0x58] sm:$0xff]  ;;  %v176_v7 = vld [vmem:[#allocation8 + $0x70] sm:$0xff]  ;;  %v175_v8 = vld [vmem:[#allocation8 + $0x68] sm:$0xff]  ;;  %s269_s12 = sshll.u32 %s486_s11, 4  ;;  %s270_s12 = int_to_ptr.vmem [resolvable:$true] %s269_s12 }
  0x28   :  { %316 = vmatpush3.msra.mxu0 %v81_v1  ;;  %351 = vmatpush3.msra.mxu1 %v177_v5  ;;  %v76_v9 = vld [vmem:[#allocation6 + $0x50] sm:$0xff]  ;;  %v174_v10 = vld [vmem:[#allocation8 + $0x60] sm:$0xff]  ;;  %v75_v11 = vld [vmem:[#allocation6 + $0x48] sm:$0xff]  ;;  %s453_s13 = scalar_lea.vmem %s270_s12, 128  ;;  %p458_p2 = scmp.lt.s32.totalorder %s270_s12, %s270_s12 }
  0x29   :  { %317 = vmatprep.subr.mxu0 %v484_v0  ;;  %352 = vmatprep.subr.mxu1 %v484_v0  ;;  %v173_v12 = vld [vmem:[#allocation8 + $0x58] sm:$0xff]  ;;  %v74_v13 = vld [vmem:[#allocation6 + $0x40] sm:$0xff]  ;;  %v172_v14 = vld [vmem:[#allocation8 + $0x50] sm:$0xff]  ;;  %p454_p1 = scmp.ne.s32.totalorder %s270_s12, %s453_s13  ;;  %p459_p3 = scmp.lt.s32.totalorder %s453_s13, %s453_s13 }
  0x2a   :  { %318 = vmatpush3.msra.mxu0 %v80_v2  ;;  %353 = vmatpush3.msra.mxu1 %v176_v7  ;;  %v73_v15 = vld [vmem:[#allocation6 + $0x38] sm:$0xff]  ;;  %v171_v16 = vld [vmem:[#allocation8 + $0x48] sm:$0xff]  ;;  %v72_v17 = vld [vmem:[#allocation6 + $0x30] sm:$0xff] }
  0x2b   :  { %319 = vmatprep.subr.mxu0 %v484_v0  ;;  %354 = vmatprep.subr.mxu1 %v484_v0  ;;  %v170_v18 = vld [vmem:[#allocation8 + $0x40] sm:$0xff]  ;;  %v71_v19 = vld [vmem:[#allocation6 + $0x28] sm:$0xff]  ;;  %v169_v20 = vld [vmem:[#allocation8 + $0x38] sm:$0xff]  ;;  %p460_p4 = por %p459_p3, %p458_p2 }
  0x2c   :  { %320 = vmatpush3.msra.mxu0 %v79_v3  ;;  %355 = vmatpush3.msra.mxu1 %v175_v8  ;;  %v70_v21 = vld [vmem:[#allocation6 + $0x20] sm:$0xff]  ;;  %v168_v22 = vld [vmem:[#allocation8 + $0x30] sm:$0xff]  ;;  %v69_v23 = vld [vmem:[#allocation6 + $0x18] sm:$0xff] }
  0x2d   :  { %321 = vmatprep.subr.mxu0 %v484_v0  ;;  %356 = vmatprep.subr.mxu1 %v484_v0  ;;  %v167_v24 = vld [vmem:[#allocation8 + $0x28] sm:$0xff]  ;;  %v68_v25 = vld [vmem:[#allocation6 + $0x10] sm:$0xff]  ;;  %v166_v26 = vld [vmem:[#allocation8 + $0x20] sm:$0xff]  ;;  %p461_p5 = pnand %p460_p4, %p454_p1 }
  0x2e   :  { %322 = vmatpush3.msra.mxu0 %v78_v4  ;;  %357 = vmatpush3.msra.mxu1 %v174_v10  ;;  %v67_v27 = vld [vmem:[#allocation6 + $0x8] sm:$0xff]  ;;  %v66_v28 = vld [vmem:[#allocation6] sm:$0xff]  ;;  %v65_v29 = vld [vmem:[#allocation3] sm:$0xff] }
  0x2f   :  { %323 = vmatprep.subr.mxu0 %v484_v0  ;;  %358 = vmatprep.subr.mxu1 %v484_v0  ;;  %v165_v30 = vld [vmem:[#allocation8 + $0x18] sm:$0xff]  ;;  %v164_v31 = vld [vmem:[#allocation8 + $0x10] sm:$0xff]  ;;  %v163_v32 = vld [vmem:[#allocation8 + $0x8] sm:$0xff] }
  0x30   :  { %324 = vmatpush3.msra.mxu0 %v77_v6  ;;  %359 = vmatpush3.msra.mxu1 %v173_v12  ;;  %v162_v33 = vld [vmem:[#allocation8] sm:$0xff]  ;;  %v279_v34 = vld [vmem:[%s571_s2] ss:$0 sm:$0xff] }
  0x31   :  { %325 = vmatprep.subr.mxu0 %v484_v0  ;;  %360 = vmatprep.subr.mxu1 %v484_v0  ;;  %v280_v40 = vld [vmem:[%s573_s4] ss:$0 sm:$0xff] }
  0x32   :  { %326 = vmatpush3.msra.mxu0 %v76_v9  ;;  %361 = vmatpush3.msra.mxu1 %v172_v14 }
  0x33   :  { %327 = vmatprep.subr.mxu0 %v484_v0  ;;  %362 = vmatprep.subr.mxu1 %v484_v0 }
  0x34   :  { %328 = vmatpush3.msra.mxu0 %v75_v11  ;;  %363 = vmatpush3.msra.mxu1 %v171_v16 }
  0x35   :  { %329 = vmatprep.subr.mxu0 %v484_v0  ;;  %364 = vmatprep.subr.mxu1 %v484_v0 }
  0x36   :  { %330 = vmatpush3.msra.mxu0 %v74_v13  ;;  %365 = vmatpush3.msra.mxu1 %v170_v18 }
  0x37   :  { %331 = vmatprep.subr.mxu0 %v484_v0  ;;  %366 = vmatprep.subr.mxu1 %v484_v0 }
  0x38   :  { %332 = vmatpush3.msra.mxu0 %v73_v15  ;;  %367 = vmatpush3.msra.mxu1 %v169_v20 }
  0x39   :  { %333 = vmatprep.subr.mxu0 %v484_v0  ;;  %368 = vmatprep.subr.mxu1 %v484_v0 }
  0x3a   :  { %334 = vmatpush3.msra.mxu0 %v72_v17  ;;  %369 = vmatpush3.msra.mxu1 %v168_v22 }
  0x3b   :  { %335 = vmatprep.subr.mxu0 %v484_v0  ;;  %370 = vmatprep.subr.mxu1 %v484_v0 }
  0x3c   :  { %336 = vmatpush3.msra.mxu0 %v71_v19  ;;  %371 = vmatpush3.msra.mxu1 %v167_v24 }
  0x3d   :  { %337 = vmatprep.subr.mxu0 %v484_v0  ;;  %372 = vmatprep.subr.mxu1 %v484_v0 }
  0x3e   :  { %338 = vmatpush3.msra.mxu0 %v70_v21  ;;  %373 = vmatpush3.msra.mxu1 %v166_v26 }
  0x3f   :  { %339 = vmatprep.subr.mxu0 %v484_v0  ;;  %374 = vmatprep.subr.mxu1 %v484_v0 }
  0x40   :  { %340 = vmatpush3.msra.mxu0 %v69_v23  ;;  %375 = vmatpush3.msra.mxu1 %v165_v30 }
  0x41   :  { %341 = vmatprep.subr.mxu0 %v484_v0  ;;  %376 = vmatprep.subr.mxu1 %v484_v0 }
  0x42   :  { %342 = vmatpush3.msra.mxu0 %v68_v25  ;;  %377 = vmatpush3.msra.mxu1 %v164_v31 }
  0x43   :  { %343 = vmatprep.subr.mxu0 %v484_v0  ;;  %378 = vmatprep.subr.mxu1 %v484_v0 }
  0x44   :  { %344 = vmatpush3.msra.mxu0 %v67_v27  ;;  %379 = vmatpush3.msra.mxu1 %v163_v32 }
  0x45   :  { %345 = vmatprep.subr.mxu0 %v484_v0  ;;  %380 = vmatprep.subr.mxu1 %v484_v0 }
  0x46   :  { %346 = vmatpush3.msra.mxu0 %v66_v28  ;;  %381 = vmatpush3.msra.mxu1 %v162_v33 }
  0x47   :  { %348 = vmatmul.mubr.f32.vlgmr.msra.gmra.mxu0 %v65_v29 }
 0x107   :  { %v155_v35 = vpop.f32.mrf.mxu0 }
 0x108   :  { %v156_v36 = vadd.f32 %v279_v34, %v155_v35 }
 0x109   :  { %v349_v37 = vpop.f32.mrf.mxu0 }
 0x10a   :  { %v159_v38 = vmul.f32 0.01, %v156_v36 }
 0x10c   :  { %v160_v39 = vmax.f32 %v156_v36, %v159_v38 }
 0x10e   :  { %383 = vmatmul.mubr.f32.vlgmr.msra.gmra.mxu1 %v160_v39 }
 0x1ce   :  { %v244_v41 = vpop.f32.mrf.mxu1 }
 0x1cf   :  { %v261_v42 = vadd.f32 %v280_v40, %v244_v41 }
 0x1d0   :  { %v384_v43 = vpop.f32.mrf.mxu1 }
 0x1d1   :  { %262 = vst [vmem:[#allocation9] sm:$0xff] %v261_v42 }
 0x1d2   :  { %464 = shalt.err (!%p461_p5)
}
 0x1d3   :  { %272 = dma.vmem_to_hbm [thread:$0]  %s270_s12, 128, %s574_s5, [#allocation5]  }
 0x1d4   :  { %477 = dma.done.wait [#allocation5], 128  }
 0x1d5   :  { %478 = vsyncadd [#allocation5], 4294967168 }
 0x1d6   :  { %276 = vsyncpa [#allocation4], 1 }
 0x1d7   :  { %277 = vsyncpa [#allocation7], 1 }
 0x1d8   :  { %278 = vsyncpa [#allocation5], 1 }

// kernel: tpu_custom_call.1
= control target key start
LH: loop header
LB: loop body
LE: loop exit
PB: predicated region body
PF: predicated region fallthrough
CT: control target
= control target key end

     0   :  { %10 = vsyncpa [#allocation4], 0  ;;  %s569_s0 = inlined_call_operand.hbm [shape: f32[8,128], index: 0, kind: input, shape index: {}]   ;;  %s570_s1 = inlined_call_operand.hbm [shape: f32[128,128], index: 1, kind: input, shape index: {}]   ;;  %s571_s2 = inlined_call_operand.vmem [shape: f32[1,128], index: 2, kind: input, shape index: {}]   ;;  %s572_s3 = inlined_call_operand.hbm [shape: f32[128,128], index: 3, kind: input, shape index: {}]   ;;  %s573_s4 = inlined_call_operand.vmem [shape: f32[1,128], index: 4, kind: input, shape index: {}]   ;;  %s574_s5 = inlined_call_operand.hbm [shape: f32[8,128], index: 5, kind: output, shape index: {}]  }
   0x1   :  { %11 = vsyncpa [#allocation7], 0 }
   0x2   :  { %12 = vsyncpa [#allocation5], 0  ;;  %s479_s18 = smov [#allocation6]  }
   0x3   :  { %s28_s19 = sshll.u32 %s479_s18, 4  ;;  %s29_s19 = int_to_ptr.vmem [resolvable:$true] %s28_s19 }
   0x4   :  { %s401_s20 = scalar_lea.vmem %s29_s19, 2048  ;;  %p406_p1 = scmp.lt.s32.totalorder %s29_s19, %s29_s19 }
   0x5   :  { %p402_p0 = scmp.ne.s32.totalorder %s29_s19, %s401_s20  ;;  %p407_p2 = scmp.lt.s32.totalorder %s401_s20, %s401_s20 }
   0x7   :  { %p408_p3 = por %p407_p2, %p406_p1 }
   0x9   :  { %p409_p4 = pnand %p408_p3, %p402_p0 }
   0xb   :  { %412 = shalt.err (!%p409_p4)
}
   0xc   :  { %s480_s21 = smov 128   ;;  %s481_s22 = smov 8  }
   0xd   :  { %34 = dma.hbm_to_vmem [thread:$0]  %s570_s1, 2048, %s29_s19, [#allocation7], %s480_s21, %s480_s21, %s481_s22  }
   0xe   :  { %s482_s25 = smov [#allocation3]   ;;  %s483_s27 = smov [#allocation8]  }
   0xf   :  { %s19_s26 = sshll.u32 %s482_s25, 4  ;;  %s42_s28 = sshll.u32 %s483_s27, 4  ;;  %s20_s26 = int_to_ptr.vmem [resolvable:$true] %s19_s26  ;;  %s43_s28 = int_to_ptr.vmem [resolvable:$true] %s42_s28 }
  0x10   :  { %s421_s29 = scalar_lea.vmem %s20_s26, 128  ;;  %p426_p6 = scmp.lt.s32.totalorder %s20_s26, %s20_s26 }
  0x11   :  { %p422_p5 = scmp.ne.s32.totalorder %s20_s26, %s421_s29  ;;  %p427_p7 = scmp.lt.s32.totalorder %s421_s29, %s421_s29 }
  0x13   :  { %p428_p8 = por %p427_p7, %p426_p6 }
  0x15   :  { %p429_p9 = pnand %p428_p8, %p422_p5 }
  0x17   :  { %432 = shalt.err (!%p429_p9)
}
  0x18   :  { %22 = dma.hbm_to_vmem [thread:$0]  %s569_s0, 128, %s20_s26, [#allocation4]  }
  0x19   :  { %s441_s7 = scalar_lea.vmem %s43_s28, 2048  ;;  %p446_p11 = scmp.lt.s32.totalorder %s43_s28, %s43_s28 }
  0x1a   :  { %p442_p10 = scmp.ne.s32.totalorder %s43_s28, %s441_s7  ;;  %p447_p12 = scmp.lt.s32.totalorder %s441_s7, %s441_s7 }
  0x1c   :  { %p448_p13 = por %p447_p12, %p446_p11 }
  0x1e   :  { %p449_p0 = pnand %p448_p13, %p442_p10 }
  0x20   :  { %452 = shalt.err (!%p449_p0)
}
  0x21   :  { %48 = dma.hbm_to_vmem [thread:$0]  %s572_s3, 2048, %s43_s28, [#allocation7], %s480_s21, %s480_s21, %s481_s22  }
  0x22   :  { %473 = dma.done.wait [#allocation4], 128  }
  0x23   :  { %474 = vsyncadd [#allocation4], 4294967168 }
  0x24   :  { %475 = dma.done.wait [#allocation7], 4096  }
  0x25   :  { %476 = vsyncadd [#allocation7], 4294963200  ;;  %v484_v0 = vmov 0.0   ;;  %vm485_vm0 = vmmov 0   ;;  %v81_v1 = vld [vmem:[#allocation6 + $0x78] sm:$0xff]  ;;  %v80_v2 = vld [vmem:[#allocation6 + $0x70] sm:$0xff] }
  0x26   :  { %315 = vmatprep.subr.mxu0 %v484_v0  ;;  %347 = vmatprep.mubr.msk.f32.mxu0 %vm485_vm0, %v484_v0  ;;  %v79_v3 = vld [vmem:[#allocation6 + $0x68] sm:$0xff]  ;;  %v78_v4 = vld [vmem:[#allocation6 + $0x60] sm:$0xff]  ;;  %v177_v5 = vld [vmem:[#allocation8 + $0x78] sm:$0xff]  ;;  %s486_s11 = smov [#allocation9]  }
  0x27   :  { %350 = vmatprep.subr.mxu1 %v484_v0  ;;  %382 = vmatprep.mubr.msk.f32.mxu1 %vm485_vm0, %v484_v0  ;;  %v77_v6 = vld [vmem:[#allocation6 + $0x58] sm:$0xff]  ;;  %v176_v7 = vld [vmem:[#allocation8 + $0x70] sm:$0xff]  ;;  %v175_v8 = vld [vmem:[#allocation8 + $0x68] sm:$0xff]  ;;  %s269_s12 = sshll.u32 %s486_s11, 4  ;;  %s270_s12 = int_to_ptr.vmem [resolvable:$true] %s269_s12 }
  0x28   :  { %316 = vmatpush3.msra.mxu0 %v81_v1  ;;  %351 = vmatpush3.msra.mxu1 %v177_v5  ;;  %v76_v9 = vld [vmem:[#allocation6 + $0x50] sm:$0xff]  ;;  %v174_v10 = vld [vmem:[#allocation8 + $0x60] sm:$0xff]  ;;  %v75_v11 = vld [vmem:[#allocation6 + $0x48] sm:$0xff]  ;;  %s453_s13 = scalar_lea.vmem %s270_s12, 128  ;;  %p458_p2 = scmp.lt.s32.totalorder %s270_s12, %s270_s12 }
  0x29   :  { %317 = vmatprep.subr.mxu0 %v484_v0  ;;  %352 = vmatprep.subr.mxu1 %v484_v0  ;;  %v173_v12 = vld [vmem:[#allocation8 + $0x58] sm:$0xff]  ;;  %v74_v13 = vld [vmem:[#allocation6 + $0x40] sm:$0xff]  ;;  %v172_v14 = vld [vmem:[#allocation8 + $0x50] sm:$0xff]  ;;  %p454_p1 = scmp.ne.s32.totalorder %s270_s12, %s453_s13  ;;  %p459_p3 = scmp.lt.s32.totalorder %s453_s13, %s453_s13 }
  0x2a   :  { %318 = vmatpush3.msra.mxu0 %v80_v2  ;;  %353 = vmatpush3.msra.mxu1 %v176_v7  ;;  %v73_v15 = vld [vmem:[#allocation6 + $0x38] sm:$0xff]  ;;  %v171_v16 = vld [vmem:[#allocation8 + $0x48] sm:$0xff]  ;;  %v72_v17 = vld [vmem:[#allocation6 + $0x30] sm:$0xff] }
  0x2b   :  { %319 = vmatprep.subr.mxu0 %v484_v0  ;;  %354 = vmatprep.subr.mxu1 %v484_v0  ;;  %v170_v18 = vld [vmem:[#allocation8 + $0x40] sm:$0xff]  ;;  %v71_v19 = vld [vmem:[#allocation6 + $0x28] sm:$0xff]  ;;  %v169_v20 = vld [vmem:[#allocation8 + $0x38] sm:$0xff]  ;;  %p460_p4 = por %p459_p3, %p458_p2 }
  0x2c   :  { %320 = vmatpush3.msra.mxu0 %v79_v3  ;;  %355 = vmatpush3.msra.mxu1 %v175_v8  ;;  %v70_v21 = vld [vmem:[#allocation6 + $0x20] sm:$0xff]  ;;  %v168_v22 = vld [vmem:[#allocation8 + $0x30] sm:$0xff]  ;;  %v69_v23 = vld [vmem:[#allocation6 + $0x18] sm:$0xff] }
  0x2d   :  { %321 = vmatprep.subr.mxu0 %v484_v0  ;;  %356 = vmatprep.subr.mxu1 %v484_v0  ;;  %v167_v24 = vld [vmem:[#allocation8 + $0x28] sm:$0xff]  ;;  %v68_v25 = vld [vmem:[#allocation6 + $0x10] sm:$0xff]  ;;  %v166_v26 = vld [vmem:[#allocation8 + $0x20] sm:$0xff]  ;;  %p461_p5 = pnand %p460_p4, %p454_p1 }
  0x2e   :  { %322 = vmatpush3.msra.mxu0 %v78_v4  ;;  %357 = vmatpush3.msra.mxu1 %v174_v10  ;;  %v67_v27 = vld [vmem:[#allocation6 + $0x8] sm:$0xff]  ;;  %v66_v28 = vld [vmem:[#allocation6] sm:$0xff]  ;;  %v65_v29 = vld [vmem:[#allocation3] sm:$0xff] }
  0x2f   :  { %323 = vmatprep.subr.mxu0 %v484_v0  ;;  %358 = vmatprep.subr.mxu1 %v484_v0  ;;  %v165_v30 = vld [vmem:[#allocation8 + $0x18] sm:$0xff]  ;;  %v164_v31 = vld [vmem:[#allocation8 + $0x10] sm:$0xff]  ;;  %v163_v32 = vld [vmem:[#allocation8 + $0x8] sm:$0xff] }
  0x30   :  { %324 = vmatpush3.msra.mxu0 %v77_v6  ;;  %359 = vmatpush3.msra.mxu1 %v173_v12  ;;  %v162_v33 = vld [vmem:[#allocation8] sm:$0xff]  ;;  %v279_v34 = vld [vmem:[%s571_s2] ss:$0 sm:$0xff] }
  0x31   :  { %325 = vmatprep.subr.mxu0 %v484_v0  ;;  %360 = vmatprep.subr.mxu1 %v484_v0  ;;  %v280_v40 = vld [vmem:[%s573_s4] ss:$0 sm:$0xff] }
  0x32   :  { %326 = vmatpush3.msra.mxu0 %v76_v9  ;;  %361 = vmatpush3.msra.mxu1 %v172_v14 }
  0x33   :  { %327 = vmatprep.subr.mxu0 %v484_v0  ;;  %362 = vmatprep.subr.mxu1 %v484_v0 }
  0x34   :  { %328 = vmatpush3.msra.mxu0 %v75_v11  ;;  %363 = vmatpush3.msra.mxu1 %v171_v16 }
  0x35   :  { %329 = vmatprep.subr.mxu0 %v484_v0  ;;  %364 = vmatprep.subr.mxu1 %v484_v0 }
  0x36   :  { %330 = vmatpush3.msra.mxu0 %v74_v13  ;;  %365 = vmatpush3.msra.mxu1 %v170_v18 }
  0x37   :  { %331 = vmatprep.subr.mxu0 %v484_v0  ;;  %366 = vmatprep.subr.mxu1 %v484_v0 }
  0x38   :  { %332 = vmatpush3.msra.mxu0 %v73_v15  ;;  %367 = vmatpush3.msra.mxu1 %v169_v20 }
  0x39   :  { %333 = vmatprep.subr.mxu0 %v484_v0  ;;  %368 = vmatprep.subr.mxu1 %v484_v0 }
  0x3a   :  { %334 = vmatpush3.msra.mxu0 %v72_v17  ;;  %369 = vmatpush3.msra.mxu1 %v168_v22 }
  0x3b   :  { %335 = vmatprep.subr.mxu0 %v484_v0  ;;  %370 = vmatprep.subr.mxu1 %v484_v0 }
  0x3c   :  { %336 = vmatpush3.msra.mxu0 %v71_v19  ;;  %371 = vmatpush3.msra.mxu1 %v167_v24 }
  0x3d   :  { %337 = vmatprep.subr.mxu0 %v484_v0  ;;  %372 = vmatprep.subr.mxu1 %v484_v0 }
  0x3e   :  { %338 = vmatpush3.msra.mxu0 %v70_v21  ;;  %373 = vmatpush3.msra.mxu1 %v166_v26 }
  0x3f   :  { %339 = vmatprep.subr.mxu0 %v484_v0  ;;  %374 = vmatprep.subr.mxu1 %v484_v0 }
  0x40   :  { %340 = vmatpush3.msra.mxu0 %v69_v23  ;;  %375 = vmatpush3.msra.mxu1 %v165_v30 }
  0x41   :  { %341 = vmatprep.subr.mxu0 %v484_v0  ;;  %376 = vmatprep.subr.mxu1 %v484_v0 }
  0x42   :  { %342 = vmatpush3.msra.mxu0 %v68_v25  ;;  %377 = vmatpush3.msra.mxu1 %v164_v31 }
  0x43   :  { %343 = vmatprep.subr.mxu0 %v484_v0  ;;  %378 = vmatprep.subr.mxu1 %v484_v0 }
  0x44   :  { %344 = vmatpush3.msra.mxu0 %v67_v27  ;;  %379 = vmatpush3.msra.mxu1 %v163_v32 }
  0x45   :  { %345 = vmatprep.subr.mxu0 %v484_v0  ;;  %380 = vmatprep.subr.mxu1 %v484_v0 }
  0x46   :  { %346 = vmatpush3.msra.mxu0 %v66_v28  ;;  %381 = vmatpush3.msra.mxu1 %v162_v33 }
  0x47   :  { %348 = vmatmul.mubr.f32.vlgmr.msra.gmra.mxu0 %v65_v29 }
 0x107   :  { %v155_v35 = vpop.f32.mrf.mxu0 }
 0x108   :  { %v156_v36 = vadd.f32 %v279_v34, %v155_v35 }
 0x109   :  { %v349_v37 = vpop.f32.mrf.mxu0 }
 0x10a   :  { %v159_v38 = vmul.f32 0.01, %v156_v36 }
 0x10c   :  { %v160_v39 = vmax.f32 %v156_v36, %v159_v38 }
 0x10e   :  { %383 = vmatmul.mubr.f32.vlgmr.msra.gmra.mxu1 %v160_v39 }
 0x1ce   :  { %v244_v41 = vpop.f32.mrf.mxu1 }
 0x1cf   :  { %v261_v42 = vadd.f32 %v280_v40, %v244_v41 }
 0x1d0   :  { %v384_v43 = vpop.f32.mrf.mxu1 }
 0x1d1   :  { %262 = vst [vmem:[#allocation9] sm:$0xff] %v261_v42 }
 0x1d2   :  { %464 = shalt.err (!%p461_p5)
}
 0x1d3   :  { %272 = dma.vmem_to_hbm [thread:$0]  %s270_s12, 128, %s574_s5, [#allocation5]  }
 0x1d4   :  { %477 = dma.done.wait [#allocation5], 128  }
 0x1d5   :  { %478 = vsyncadd [#allocation5], 4294967168 }
 0x1d6   :  { %276 = vsyncpa [#allocation4], 1 }
 0x1d7   :  { %277 = vsyncpa [#allocation7], 1 }
 0x1d8   :  { %278 = vsyncpa [#allocation5], 1 }

</bundles_post_ra>
